<compile_context>
chip_gen: v6e
topology: v6e:2x2x1
jax: 0.10.0
libtpu: 0.0.40
codegen_flags: <defaults>
</compile_context>

<pallas_src>
import jax
import jax.numpy as jnp
from jax.experimental import pallas as pl
from jax.experimental.pallas import tpu as pltpu


def _logreg_kernel_vpu(x_ref, w_ref, b_ref, o_ref):
    """outDim == 1 path: z = sum(x * w_row, -1) + b; bias read from SMEM."""
    x = x_ref[...]                                    # (Bt, D)  VMEM
    w = w_ref[...]                                    # (1, D)   VMEM, resident
    z = jnp.sum(x * w, axis=-1, keepdims=True)        # VPU mul + XLU lane-reduce
    z = z + b_ref[0]                                  # SMEM scalar read (free)
    o_ref[...] = jax.nn.sigmoid(z).astype(o_ref.dtype)


def _logreg_kernel_mxu(x_ref, w_ref, b_ref, o_ref):
    """General outDim path: MXU matmul contracting the D axis of both operands
    directly (no w.T -> no XLU transpose / weight relayout before MXU push)."""
    x = x_ref[...]                                    # (Bt, D)
    w = w_ref[...]                                    # (O, D)
    z = jax.lax.dot_general(
        x, w,
        dimension_numbers=(((1,), (1,)), ((), ())),   # contract x.D with w.D
        preferred_element_type=jnp.float32)           # (Bt, O)
    z = z + b_ref[...]                                # (1, O) broadcast
    o_ref[...] = jax.nn.sigmoid(z).astype(o_ref.dtype)


def logistic_reg_forward(x, weight, bias, *, max_block_b=1024):
    """x: (B, inpDim) f32, weight: (outDim, inpDim) f32, bias: (outDim,) f32."""
    B, D = x.shape
    O = weight.shape[0]

    # Tile the batch only when it is large; small B uses one full block.
    bt = B if B <= max_block_b else max_block_b
    grid = (pl.cdiv(B, bt),)

    cost = pl.CostEstimate(
        flops=2 * B * D * O,
        transcendentals=B * O,
        bytes_accessed=4 * (B * D + O * D + O + B * O),
    )

    if O == 1:
        kernel = _logreg_kernel_vpu
        bias_arg = bias.reshape((1,)).astype(jnp.float32)
        bias_spec = pl.BlockSpec(memory_space=pltpu.MemorySpace.SMEM)
    else:
        kernel = _logreg_kernel_mxu
        bias_arg = bias.reshape((1, O)).astype(jnp.float32)
        bias_spec = pl.BlockSpec((1, O), lambda i: (0, 0))

    return pl.pallas_call(
        kernel,
        out_shape=jax.ShapeDtypeStruct((B, O), jnp.float32),
        grid=grid,
        in_specs=[
            pl.BlockSpec((bt, D), lambda i: (i, 0)),   # x tile marches over B
            pl.BlockSpec((O, D), lambda i: (0, 0)),    # weight resident
            bias_spec,
        ],
        out_specs=pl.BlockSpec((bt, O), lambda i: (i, 0)),
        compiler_params=pltpu.CompilerParams(
            dimension_semantics=("parallel",)),        # v7x: shard B over 2 TCs
        cost_estimate=cost,
    )(x, weight, bias_arg)


if __name__ == "__main__":
    # Credit-fraud-like logistic regression head: inpDim features -> 1 logit.
    batch, inpDim, outDim = 8, 32, 1

    key = jax.random.PRNGKey(0)
    kx, kw, kb = jax.random.split(key, 3)

    x = jax.random.normal(kx, (batch, inpDim), dtype=jnp.float32)

    # torch.nn.Linear-style init: U(-1/sqrt(inpDim), 1/sqrt(inpDim))
    bound = 1.0 / jnp.sqrt(jnp.float32(inpDim))
    weight = jax.random.uniform(kw, (outDim, inpDim), jnp.float32, -bound, bound)
    bias = jax.random.uniform(kb, (outDim,), jnp.float32, -bound, bound)

    out = jax.block_until_ready(logistic_reg_forward(x, weight, bias))
    ref = jax.nn.sigmoid(x @ weight.T + bias)
    assert out.shape == (batch, outDim)
    assert jnp.allclose(out, ref, atol=1e-5, rtol=1e-5)

    # Also exercise the general (outDim > 1) MXU path once.
    outDim2 = 4
    kw2, kb2 = jax.random.split(kb)
    weight2 = jax.random.uniform(kw2, (outDim2, inpDim), jnp.float32, -bound, bound)
    bias2 = jax.random.uniform(kb2, (outDim2,), jnp.float32, -bound, bound)
    out2 = jax.block_until_ready(logistic_reg_forward(x, weight2, bias2))
    ref2 = jax.nn.sigmoid(x @ weight2.T + bias2)
    assert out2.shape == (batch, outDim2)
    assert jnp.allclose(out2, ref2, atol=1e-5, rtol=1e-5)

    print("KERNEL_OK")
</pallas_src>

<mosaic_0001>
module attributes {stable_mosaic.version = 11 : i64} {
  func.func @_logreg_kernel_vpu(%arg0: i32, %arg1: memref<8x32xf32, #tpu.memory_space<vmem>>, %arg2: memref<1x32xf32, #tpu.memory_space<vmem>>, %arg3: memref<1xf32, #tpu.memory_space<smem>>, %arg4: memref<8x1xf32, #tpu.memory_space<vmem>>) attributes {dimension_semantics = [#tpu.dimension_semantics<parallel>], iteration_bounds = array<i64: 1>, scalar_prefetch = 0 : i64, scratch_operands = 0 : i64, tpu.core_type = #tpu.core_type<tc>, window_params = [{transform_indices = @transform_0, window_bounds = array<i64: 8, 32>}, {pipeline_mode = #tpu.pipeline_mode<synchronous>, transform_indices = @transform_1, window_bounds = array<i64: 1, 32>}, {transform_indices = @transform_2, window_bounds = array<i64: 1>}, {transform_indices = @transform_3, window_bounds = array<i64: 8, 1>}]} {
    %c0 = arith.constant 0 : index
    %c0_0 = arith.constant 0 : index
    %0 = vector.load %arg1[%c0, %c0_0] : memref<8x32xf32, #tpu.memory_space<vmem>>, vector<8x32xf32>
    %c0_1 = arith.constant 0 : index
    %c0_2 = arith.constant 0 : index
    %1 = vector.load %arg2[%c0_1, %c0_2] : memref<1x32xf32, #tpu.memory_space<vmem>>, vector<1x32xf32>
    %2 = vector.broadcast %1 : vector<1x32xf32> to vector<8x32xf32>
    %3 = arith.mulf %0, %2 : vector<8x32xf32>
    %cst = arith.constant dense<0.000000e+00> : vector<8xf32>
    %4 = vector.multi_reduction <add>, %3, %cst [1] : vector<8x32xf32> to vector<8xf32>
    %5 = vector.shape_cast %4 : vector<8xf32> to vector<8x1xf32>
    %c0_3 = arith.constant 0 : index
    %6 = memref.load %arg3[%c0_3] : memref<1xf32, #tpu.memory_space<smem>>
    %7 = vector.broadcast %6 : f32 to vector<8x1xf32>
    %8 = arith.addf %5, %7 : vector<8x1xf32>
    %9 = arith.negf %8 : vector<8x1xf32>
    %10 = math.exp %9 : vector<8x1xf32>
    %cst_4 = arith.constant 1.000000e+00 : f32
    %11 = vector.broadcast %cst_4 : f32 to vector<8x1xf32>
    %12 = arith.addf %11, %10 : vector<8x1xf32>
    %13 = arith.divf %11, %12 : vector<8x1xf32>
    %c0_5 = arith.constant 0 : index
    %c0_6 = arith.constant 0 : index
    %14 = vector.load %arg4[%c0_5, %c0_6] : memref<8x1xf32, #tpu.memory_space<vmem>>, vector<8x1xf32>
    tpu.vector_store %arg4[%c0_5, %c0_6], %13 {strides = array<i32>} : memref<8x1xf32, #tpu.memory_space<vmem>>, vector<8x1xf32>,
    return
  }
  func.func @transform_0(%arg0: i32) -> (i32, i32) {
    %c0_i32 = arith.constant 0 : i32
    %c0_i32_0 = arith.constant 0 : i32
    return %arg0, %c0_i32 : i32, i32
  }
  func.func @transform_1(%arg0: i32) -> (i32, i32) {
    %c0_i32 = arith.constant 0 : i32
    %c0_i32_0 = arith.constant 0 : i32
    %c0_i32_1 = arith.constant 0 : i32
    return %c0_i32, %c0_i32_0 : i32, i32
  }
  func.func @transform_2(%arg0: i32) -> i32 {
    %c0_i32 = arith.constant 0 : i32
    %c0_i32_0 = arith.constant 0 : i32
    return %c0_i32 : i32
  }
  func.func @transform_3(%arg0: i32) -> (i32, i32) {
    %c0_i32 = arith.constant 0 : i32
    %c0_i32_0 = arith.constant 0 : i32
    return %arg0, %c0_i32 : i32, i32
  }
}

</mosaic_0001>

<bundles_post_ra>
// kernel: tpu_custom_call.1
= control target key start
LH: loop header
LB: loop body
LE: loop exit
PB: predicated region body
PF: predicated region fallthrough
CT: control target
= control target key end

     0   :  { %9 = vsyncpa [#allocation4], 0  ;;  %s85_s12 = smov [#allocation3]   ;;  %s118_s0 = inlined_call_operand.hbm [shape: f32[8,32], index: 0, kind: input, shape index: {}]   ;;  %s119_s1 = inlined_call_operand.vmem [shape: f32[1,32], index: 1, kind: input, shape index: {}]   ;;  %s120_s2 = inlined_call_operand.<no memory space> [shape: f32[1], index: 2, kind: input, shape index: {}]   ;;  %s121_s3 = inlined_call_operand.vmem [shape: f32[8,1], index: 3, kind: output, shape index: {}]  }
   0x1   :  { %s16_s13 = sshll.u32 %s85_s12, 4  ;;  %s17_s13 = int_to_ptr.vmem [resolvable:$true] %s16_s13 }
   0x2   :  { %s71_s14 = scalar_lea.vmem %s17_s13, 128  ;;  %p76_p1 = scmp.lt.s32.totalorder %s17_s13, %s17_s13 }
   0x3   :  { %p72_p0 = scmp.ne.s32.totalorder %s17_s13, %s71_s14  ;;  %p77_p2 = scmp.lt.s32.totalorder %s71_s14, %s71_s14 }
   0x5   :  { %p78_p3 = por %p77_p2, %p76_p1 }
   0x7   :  { %p79_p4 = pnand %p78_p3, %p72_p0 }
   0x9   :  { %82 = shalt.err (!%p79_p4)
}
   0xa   :  { %19 = dma.hbm_to_vmem [thread:$0]  %s118_s0, 128, %s17_s13, [#allocation4]  }
   0xb   :  { %83 = dma.done.wait [#allocation4], 128  }
   0xc   :  { %84 = vsyncadd [#allocation4], 4294967168  ;;  %v27_v0 = vld [vmem:[#allocation3] sm:$0xff]  ;;  %vm36_vm0 = vcmask 261120   ;;  %v41_v4 = vstv %s120_s2  ;;  %vm49_vm1 = vcmask 7168  }
   0xd   :  { %v56_v1 = vld [vmem:[%s119_s1] ss:$0 sm:$0xff] }
   0xe   :  { %v35_v2 = vmul.f32 %v56_v1, %v27_v0 }
  0x10   :  { %v37_v3 = vsel %vm36_vm0, %v35_v2, 0.0 }
  0x11   :  { %38 = vadd.xlane.f32.xlu0 %v37_v3 }
  0x9a   :  { %v39_v5 = vpop.xlane.xlu0 %38 }
  0x9b   :  { %v42_v6 = vadd.f32 %v41_v4, %v39_v5 }
  0x9d   :  { %v57_v7 = vmul.f32 -1.442695, %v42_v6 }
  0x9f   :  { %59 = vpow2.f32 %v57_v7 }
  0xac   :  { %v60_v8 = vpop.eup %59 }
  0xad   :  { %v46_v9 = vadd.f32 1.0, %v60_v8 }
  0xaf   :  { %61 = vrcp.f32 %v46_v9 }
  0xbc   :  { %v62_v10 = vpop.eup %61 }
  0xbd   :  { %50 = vst.msk [vmem:[%s121_s3] sm:$0xff] %vm49_vm1, %v62_v10 }
  0xbe   :  { %55 = vsyncpa [#allocation4], 1 }

</bundles_post_ra>
